<compile_context>
chip_gen: v6e
topology: v6e:2x2x1
jax: 0.10.0
libtpu: 0.0.40
codegen_flags: <defaults>
</compile_context>

<pallas_src>
import functools
import math

import jax
import jax.numpy as jnp
from jax.experimental import pallas as pl
from jax.experimental.pallas import tpu as pltpu

LANES = 128


def _dc_topk_kernel(x_ref, lab_ref, ce_ref, stats_ref,
                    tp_acc, ps_acc, cnt_acc,
                    *, n_classes, tile, n_spatial):
    s = pl.program_id(1)

    @pl.when(s == 0)
    def _():
        tp_acc[...] = jnp.zeros_like(tp_acc)
        ps_acc[...] = jnp.zeros_like(ps_acc)
        cnt_acc[...] = jnp.zeros_like(cnt_acc)

    # Validity mask for the (possibly partial) tail tile: true spatial index < S.
    pos = s * tile + jax.lax.broadcasted_iota(jnp.int32, (1, 1, tile), 2)
    valid = pos < n_spatial                       # (1, 1, tile) bool
    vf = valid.astype(jnp.float32)

    x = x_ref[...].astype(jnp.float32)            # (1, C, tile) logits
    x = jnp.where(valid, x, 0.0)                  # scrub garbage in padded tail

    lab = lab_ref[...]                            # (1, 1, tile) int32 labels
    cls = jax.lax.broadcasted_iota(jnp.int32, (1, n_classes, tile), 1)
    # One-hot with the tail-validity mask folded in (saves a multiply later).
    oh = jnp.where(jnp.logical_and(cls == lab, valid), 1.0, 0.0)   # (1, C, tile)

    # Softmax over the channel axis (per spatial position).
    m = jnp.max(x, axis=1, keepdims=True)         # (1, 1, tile)
    e = jnp.exp(x - m)
    sexp = jnp.sum(e, axis=1, keepdims=True)
    inv = 1.0 / sexp                              # one divide per voxel, not C
    p = e * inv                                   # (1, C, tile)

    # Per-voxel cross entropy = logsumexp(logits) - logit[target].
    lse = m + jnp.log(sexp)
    logit_t = jnp.sum(x * oh, axis=1, keepdims=True)
    ce = lse - logit_t
    ce_ref[...] = jnp.where(valid, ce, -1e30)     # sentinel on padded lanes

    # Dice partials: only VPU element-wise mul/add in the hot loop.
    #   tp  = sum p * onehot
    #   fp  = sum p * (1 - onehot) = sum p        - tp   (derived in epilogue)
    #   fn  = sum (1 - p) * onehot = count(label) - tp   (derived in epilogue)
    tp_acc[...] += (p * oh)[0]
    ps_acc[...] += (p * vf)[0]
    cnt_acc[...] += oh[0]

    # Epilogue: lane reductions + tiny store, once per batch element.
    @pl.when(s == pl.num_programs(1) - 1)
    def _():
        tp = jnp.sum(tp_acc[...], axis=1, keepdims=True)    # (C, 1)
        ps = jnp.sum(ps_acc[...], axis=1, keepdims=True)
        cnt = jnp.sum(cnt_acc[...], axis=1, keepdims=True)
        fp = ps - tp
        fn = cnt - tp
        stats_ref[0] = jnp.concatenate([tp, fp, fn], axis=1)   # (C, 3)


@functools.partial(
    jax.jit,
    static_argnames=("weight_ce", "weight_dice", "k", "smooth", "batch_dice", "do_bg"),
)
def dc_and_topk_loss(net_output, target, *, weight_ce=1.0, weight_dice=1.0,
                     k=10.0, smooth=1e-5, batch_dice=False, do_bg=False):
    """net_output: (B, C, *spatial); target: (B, 1, *spatial) integer labels."""
    B, C = net_output.shape[0], net_output.shape[1]
    S = math.prod(net_output.shape[2:])
    assert target.shape[0] == B and target.shape[1] == 1
    assert math.prod(target.shape[2:]) == S

    # Free reshapes: keep native memory order, no padding, no wrapper upcast.
    x3 = net_output.reshape(B, C, S)
    lab3 = target.astype(jnp.int32).reshape(B, 1, S)

    # Tile selection: as large as possible (lane-aligned) under a per-step
    # VMEM budget.  Footprint ~ tile*4*(5C + 32) bytes:
    #   2x(C*tile) logits double-buffer + 2x(8*tile) labels + 2x(8*tile) CE out
    #   (sublane-padded 1-row blocks) + 3x(C*tile) scratch accumulators.
    vmem_budget = 10 * 1024 * 1024
    tile_cap = vmem_budget // (4 * (5 * C + 32))
    tile_cap = max(LANES, (tile_cap // LANES) * LANES)
    tile = max(LANES, min(tile_cap, pl.cdiv(S, LANES) * LANES))
    ns = pl.cdiv(S, tile)
    s_pad = ns * tile

    kernel = functools.partial(_dc_topk_kernel,
                               n_classes=C, tile=tile, n_spatial=S)

    ce_map, stats = pl.pallas_call(
        kernel,
        out_shape=(
            jax.ShapeDtypeStruct((B, 1, s_pad), jnp.float32),  # per-voxel CE
            jax.ShapeDtypeStruct((B, C, 3), jnp.float32),      # tp / fp / fn
        ),
        grid_spec=pltpu.PrefetchScalarGridSpec(
            num_scalar_prefetch=0,
            grid=(B, ns),
            in_specs=[
                pl.BlockSpec((1, C, tile), lambda b, s: (b, 0, s)),
                pl.BlockSpec((1, 1, tile), lambda b, s: (b, 0, s)),
            ],
            out_specs=[
                pl.BlockSpec((1, 1, tile), lambda b, s: (b, 0, s)),
                pl.BlockSpec((1, C, 3), lambda b, s: (b, 0, 0)),
            ],
            scratch_shapes=[pltpu.VMEM((C, tile), jnp.float32)] * 3,
        ),
        compiler_params=pltpu.CompilerParams(
            dimension_semantics=("parallel", "arbitrary"),
            vmem_limit_bytes=32 * 1024 * 1024,
        ),
    )(x3, lab3)

    # ---- TopK cross-entropy (global selection done in the wrapper) ----
    n_vox = B * S
    k_count = max(1, int(n_vox * k / 100))
    topk_vals = jax.lax.top_k(ce_map.reshape(-1), k_count)[0]
    ce_loss = jnp.mean(topk_vals)

    # ---- Soft Dice ----
    tp = stats[:, :, 0]
    fp = stats[:, :, 1]
    fn = stats[:, :, 2]
    if batch_dice:
        tp, fp, fn = tp.sum(0), fp.sum(0), fn.sum(0)
    dc = (2.0 * tp + smooth) / (2.0 * tp + fp + fn + smooth + 1e-8)
    if not do_bg:
        dc = dc[1:] if batch_dice else dc[:, 1:]
    dc_loss = -jnp.mean(dc)

    return weight_ce * ce_loss + weight_dice * dc_loss


def _reference(net_output, target, *, weight_ce, weight_dice, k, smooth,
               batch_dice, do_bg):
    logits = net_output.astype(jnp.float32)
    C = logits.shape[1]
    lab = target[:, 0].astype(jnp.int32)                    # (B, *spatial)

    # TopK CE
    logp = jax.nn.log_softmax(logits, axis=1)
    ce_map = -jnp.take_along_axis(logp, lab[:, None], axis=1)[:, 0]
    n_vox = ce_map.size
    k_count = max(1, int(n_vox * k / 100))
    ce_loss = jnp.mean(jax.lax.top_k(ce_map.reshape(-1), k_count)[0])

    # Soft Dice
    p = jax.nn.softmax(logits, axis=1)
    oh = jax.nn.one_hot(lab, C, axis=1, dtype=jnp.float32)
    axes = tuple(range(2, logits.ndim))
    tp = jnp.sum(p * oh, axis=axes)
    fp = jnp.sum(p * (1.0 - oh), axis=axes)
    fn = jnp.sum((1.0 - p) * oh, axis=axes)
    if batch_dice:
        tp, fp, fn = tp.sum(0), fp.sum(0), fn.sum(0)
    dc = (2.0 * tp + smooth) / (2.0 * tp + fp + fn + smooth + 1e-8)
    if not do_bg:
        dc = dc[1:] if batch_dice else dc[:, 1:]
    dc_loss = -jnp.mean(dc)

    return weight_ce * ce_loss + weight_dice * dc_loss


if __name__ == "__main__":
    key = jax.random.PRNGKey(0)
    k1, k2 = jax.random.split(key)

    B, C, H, W = 2, 4, 16, 16
    net_output = jax.random.normal(k1, (B, C, H, W), dtype=jnp.float32) * 2.0
    target = jax.random.randint(k2, (B, 1, H, W), 0, C, dtype=jnp.int32)

    cfg = dict(weight_ce=1.0, weight_dice=1.0, k=10.0, smooth=1e-5,
               batch_dice=False, do_bg=False)

    out = dc_and_topk_loss(net_output, target, **cfg)
    out = jax.block_until_ready(out)

    ref = _reference(net_output, target, **cfg)
    assert jnp.allclose(out, ref, rtol=1e-5, atol=1e-5), (out, ref)

    print("KERNEL_OK")
</pallas_src>

<mosaic_0001>
module attributes {stable_mosaic.version = 11 : i64} {
  func.func @_dc_topk_kernel(%arg0: i32, %arg1: i32, %arg2: memref<1x4x256xf32, #tpu.memory_space<vmem>>, %arg3: memref<1x1x256xi32, #tpu.memory_space<vmem>>, %arg4: memref<1x1x256xf32, #tpu.memory_space<vmem>>, %arg5: memref<1x4x3xf32, #tpu.memory_space<vmem>>, %arg6: memref<4x256xf32, #tpu.memory_space<vmem>>, %arg7: memref<4x256xf32, #tpu.memory_space<vmem>>, %arg8: memref<4x256xf32, #tpu.memory_space<vmem>>) attributes {dimension_semantics = [#tpu.dimension_semantics<parallel>, #tpu.dimension_semantics<arbitrary>], iteration_bounds = array<i64: 2, 1>, scalar_prefetch = 0 : i64, scratch_operands = 3 : i64, tpu.core_type = #tpu.core_type<tc>, window_params = [{transform_indices = @transform_0, window_bounds = array<i64: 1, 4, 256>}, {transform_indices = @transform_1, window_bounds = array<i64: 1, 1, 256>}, {transform_indices = @transform_2, window_bounds = array<i64: 1, 1, 256>}, {transform_indices = @transform_3, window_bounds = array<i64: 1, 4, 3>}]} {
    %c0_i32 = arith.constant 0 : i32
    %0 = arith.cmpi eq, %arg1, %c0_i32 : i32
    %1 = arith.extui %0 : i1 to i32
    %c0_i32_0 = arith.constant 0 : i32
    %2 = arith.cmpi ne, %1, %c0_i32_0 : i32
    scf.if %2 {
      %cst_31 = arith.constant 0.000000e+00 : f32
      %63 = vector.broadcast %cst_31 : f32 to vector<4x256xf32>
      %c0_32 = arith.constant 0 : index
      %c0_33 = arith.constant 0 : index
      %64 = vector.load %arg6[%c0_32, %c0_33] : memref<4x256xf32, #tpu.memory_space<vmem>>, vector<4x256xf32>
      tpu.vector_store %arg6[%c0_32, %c0_33], %63 {strides = array<i32>} : memref<4x256xf32, #tpu.memory_space<vmem>>, vector<4x256xf32>,
      %cst_34 = arith.constant 0.000000e+00 : f32
      %65 = vector.broadcast %cst_34 : f32 to vector<4x256xf32>
      %c0_35 = arith.constant 0 : index
      %c0_36 = arith.constant 0 : index
      %66 = vector.load %arg7[%c0_35, %c0_36] : memref<4x256xf32, #tpu.memory_space<vmem>>, vector<4x256xf32>
      tpu.vector_store %arg7[%c0_35, %c0_36], %65 {strides = array<i32>} : memref<4x256xf32, #tpu.memory_space<vmem>>, vector<4x256xf32>,
      %cst_37 = arith.constant 0.000000e+00 : f32
      %67 = vector.broadcast %cst_37 : f32 to vector<4x256xf32>
      %c0_38 = arith.constant 0 : index
      %c0_39 = arith.constant 0 : index
      %68 = vector.load %arg8[%c0_38, %c0_39] : memref<4x256xf32, #tpu.memory_space<vmem>>, vector<4x256xf32>
      tpu.vector_store %arg8[%c0_38, %c0_39], %67 {strides = array<i32>} : memref<4x256xf32, #tpu.memory_space<vmem>>, vector<4x256xf32>,
    } else {
    }
    %c256_i32 = arith.constant 256 : i32
    %3 = arith.muli %arg1, %c256_i32 : i32
    %4 = tpu.iota {dimensions = array<i32: 2>} : vector<1x1x256xi32>
    %5 = vector.broadcast %3 : i32 to vector<1x1x256xi32>
    %6 = arith.addi %5, %4 : vector<1x1x256xi32>
    %c256_i32_1 = arith.constant 256 : i32
    %7 = vector.broadcast %c256_i32_1 : i32 to vector<1x1x256xi32>
    %8 = arith.cmpi slt, %6, %7 : vector<1x1x256xi32>
    %9 = arith.extui %8 : vector<1x1x256xi1> to vector<1x1x256xi32>
    %10 = arith.sitofp %9 : vector<1x1x256xi32> to vector<1x1x256xf32>
    %c0 = arith.constant 0 : index
    %c0_2 = arith.constant 0 : index
    %c0_3 = arith.constant 0 : index
    %11 = vector.load %arg2[%c0, %c0_2, %c0_3] : memref<1x4x256xf32, #tpu.memory_space<vmem>>, vector<1x4x256xf32>
    %cst = arith.constant 0.000000e+00 : f32
    %12 = vector.shape_cast %8 : vector<1x1x256xi1> to vector<1x1x256xi1>
    %13 = vector.broadcast %12 : vector<1x1x256xi1> to vector<1x4x256xi1>
    %14 = vector.broadcast %cst : f32 to vector<1x4x256xf32>
    %15 = arith.select %13, %11, %14 : vector<1x4x256xi1>, vector<1x4x256xf32>
    %c0_4 = arith.constant 0 : index
    %c0_5 = arith.constant 0 : index
    %c0_6 = arith.constant 0 : index
    %16 = vector.load %arg3[%c0_4, %c0_5, %c0_6] : memref<1x1x256xi32, #tpu.memory_space<vmem>>, vector<1x1x256xi32>
    %17 = tpu.iota {dimensions = array<i32: 1>} : vector<1x4x256xi32>
    %18 = vector.broadcast %16 : vector<1x1x256xi32> to vector<1x4x256xi32>
    %19 = arith.cmpi eq, %17, %18 : vector<1x4x256xi32>
    %20 = vector.broadcast %8 : vector<1x1x256xi1> to vector<1x4x256xi1>
    %21 = arith.andi %19, %20 : vector<1x4x256xi1>
    %cst_7 = arith.constant 1.000000e+00 : f32
    %cst_8 = arith.constant 0.000000e+00 : f32
    %22 = vector.broadcast %cst_7 : f32 to vector<1x4x256xf32>
    %23 = vector.broadcast %cst_8 : f32 to vector<1x4x256xf32>
    %24 = arith.select %21, %22, %23 : vector<1x4x256xi1>, vector<1x4x256xf32>
    %cst_9 = arith.constant dense<0xFF800000> : vector<1x256xf32>
    %25 = vector.multi_reduction <maximumf>, %15, %cst_9 [1] : vector<1x4x256xf32> to vector<1x256xf32>
    %26 = vector.shape_cast %25 : vector<1x256xf32> to vector<1x1x256xf32>
    %27 = vector.broadcast %26 : vector<1x1x256xf32> to vector<1x4x256xf32>
    %28 = arith.subf %15, %27 : vector<1x4x256xf32>
    %29 = math.exp %28 : vector<1x4x256xf32>
    %cst_10 = arith.constant dense<0.000000e+00> : vector<1x256xf32>
    %30 = vector.multi_reduction <add>, %29, %cst_10 [1] : vector<1x4x256xf32> to vector<1x256xf32>
    %31 = vector.shape_cast %30 : vector<1x256xf32> to vector<1x1x256xf32>
    %cst_11 = arith.constant 1.000000e+00 : f32
    %32 = vector.broadcast %cst_11 : f32 to vector<1x1x256xf32>
    %33 = arith.divf %32, %31 : vector<1x1x256xf32>
    %34 = vector.broadcast %33 : vector<1x1x256xf32> to vector<1x4x256xf32>
    %35 = arith.mulf %29, %34 : vector<1x4x256xf32>
    %36 = math.log %31 : vector<1x1x256xf32>
    %37 = arith.addf %26, %36 : vector<1x1x256xf32>
    %38 = arith.mulf %15, %24 : vector<1x4x256xf32>
    %cst_12 = arith.constant dense<0.000000e+00> : vector<1x256xf32>
    %39 = vector.multi_reduction <add>, %38, %cst_12 [1] : vector<1x4x256xf32> to vector<1x256xf32>
    %40 = vector.shape_cast %39 : vector<1x256xf32> to vector<1x1x256xf32>
    %41 = arith.subf %37, %40 : vector<1x1x256xf32>
    %cst_13 = arith.constant -1.000000e+30 : f32
    %42 = vector.broadcast %cst_13 : f32 to vector<1x1x256xf32>
    %43 = arith.select %8, %41, %42 : vector<1x1x256xi1>, vector<1x1x256xf32>
    %c0_14 = arith.constant 0 : index
    %c0_15 = arith.constant 0 : index
    %c0_16 = arith.constant 0 : index
    %44 = vector.load %arg4[%c0_14, %c0_15, %c0_16] : memref<1x1x256xf32, #tpu.memory_space<vmem>>, vector<1x1x256xf32>
    tpu.vector_store %arg4[%c0_14, %c0_15, %c0_16], %43 {strides = array<i32>} : memref<1x1x256xf32, #tpu.memory_space<vmem>>, vector<1x1x256xf32>,
    %c0_17 = arith.constant 0 : index
    %c0_18 = arith.constant 0 : index
    %45 = vector.load %arg6[%c0_17, %c0_18] : memref<4x256xf32, #tpu.memory_space<vmem>>, vector<4x256xf32>
    %46 = arith.mulf %35, %24 : vector<1x4x256xf32>
    %47 = vector.shape_cast %46 : vector<1x4x256xf32> to vector<4x256xf32>
    %48 = arith.addf %45, %47 : vector<4x256xf32>
    %c0_19 = arith.constant 0 : index
    %c0_20 = arith.constant 0 : index
    %49 = vector.load %arg6[%c0_19, %c0_20] : memref<4x256xf32, #tpu.memory_space<vmem>>, vector<4x256xf32>
    tpu.vector_store %arg6[%c0_19, %c0_20], %48 {strides = array<i32>} : memref<4x256xf32, #tpu.memory_space<vmem>>, vector<4x256xf32>,
    %c0_21 = arith.constant 0 : index
    %c0_22 = arith.constant 0 : index
    %50 = vector.load %arg7[%c0_21, %c0_22] : memref<4x256xf32, #tpu.memory_space<vmem>>, vector<4x256xf32>
    %51 = vector.broadcast %10 : vector<1x1x256xf32> to vector<1x4x256xf32>
    %52 = arith.mulf %35, %51 : vector<1x4x256xf32>
    %53 = vector.shape_cast %52 : vector<1x4x256xf32> to vector<4x256xf32>
    %54 = arith.addf %50, %53 : vector<4x256xf32>
    %c0_23 = arith.constant 0 : index
    %c0_24 = arith.constant 0 : index
    %55 = vector.load %arg7[%c0_23, %c0_24] : memref<4x256xf32, #tpu.memory_space<vmem>>, vector<4x256xf32>
    tpu.vector_store %arg7[%c0_23, %c0_24], %54 {strides = array<i32>} : memref<4x256xf32, #tpu.memory_space<vmem>>, vector<4x256xf32>,
    %c0_25 = arith.constant 0 : index
    %c0_26 = arith.constant 0 : index
    %56 = vector.load %arg8[%c0_25, %c0_26] : memref<4x256xf32, #tpu.memory_space<vmem>>, vector<4x256xf32>
    %57 = vector.shape_cast %24 : vector<1x4x256xf32> to vector<4x256xf32>
    %58 = arith.addf %56, %57 : vector<4x256xf32>
    %c0_27 = arith.constant 0 : index
    %c0_28 = arith.constant 0 : index
    %59 = vector.load %arg8[%c0_27, %c0_28] : memref<4x256xf32, #tpu.memory_space<vmem>>, vector<4x256xf32>
    tpu.vector_store %arg8[%c0_27, %c0_28], %58 {strides = array<i32>} : memref<4x256xf32, #tpu.memory_space<vmem>>, vector<4x256xf32>,
    %c0_i32_29 = arith.constant 0 : i32
    %60 = arith.cmpi eq, %arg1, %c0_i32_29 : i32
    %61 = arith.extui %60 : i1 to i32
    %c0_i32_30 = arith.constant 0 : i32
    %62 = arith.cmpi ne, %61, %c0_i32_30 : i32
    scf.if %62 {
      %c0_31 = arith.constant 0 : index
      %c0_32 = arith.constant 0 : index
      %63 = vector.load %arg6[%c0_31, %c0_32] : memref<4x256xf32, #tpu.memory_space<vmem>>, vector<4x256xf32>
      %cst_33 = arith.constant dense<0.000000e+00> : vector<4xf32>
      %64 = vector.multi_reduction <add>, %63, %cst_33 [1] : vector<4x256xf32> to vector<4xf32>
      %65 = vector.shape_cast %64 : vector<4xf32> to vector<4x1xf32>
      %c0_34 = arith.constant 0 : index
      %c0_35 = arith.constant 0 : index
      %66 = vector.load %arg7[%c0_34, %c0_35] : memref<4x256xf32, #tpu.memory_space<vmem>>, vector<4x256xf32>
      %cst_36 = arith.constant dense<0.000000e+00> : vector<4xf32>
      %67 = vector.multi_reduction <add>, %66, %cst_36 [1] : vector<4x256xf32> to vector<4xf32>
      %68 = vector.shape_cast %67 : vector<4xf32> to vector<4x1xf32>
      %c0_37 = arith.constant 0 : index
      %c0_38 = arith.constant 0 : index
      %69 = vector.load %arg8[%c0_37, %c0_38] : memref<4x256xf32, #tpu.memory_space<vmem>>, vector<4x256xf32>
      %cst_39 = arith.constant dense<0.000000e+00> : vector<4xf32>
      %70 = vector.multi_reduction <add>, %69, %cst_39 [1] : vector<4x256xf32> to vector<4xf32>
      %71 = vector.shape_cast %70 : vector<4xf32> to vector<4x1xf32>
      %72 = arith.subf %68, %65 : vector<4x1xf32>
      %73 = arith.subf %71, %65 : vector<4x1xf32>
      %74 = tpu.concatenate %65, %72, %73 in 1 : vector<4x1xf32>, vector<4x1xf32>, vector<4x1xf32> -> vector<4x3xf32>
      %c0_40 = arith.constant 0 : index
      %c0_41 = arith.constant 0 : index
      %c0_42 = arith.constant 0 : index
      %75 = vector.load %arg5[%c0_40, %c0_41, %c0_42] : memref<1x4x3xf32, #tpu.memory_space<vmem>>, vector<1x4x3xf32>
      %76 = vector.shape_cast %75 : vector<1x4x3xf32> to vector<4x3xf32>
      %77 = vector.shape_cast %74 : vector<4x3xf32> to vector<1x4x3xf32>
      tpu.vector_store %arg5[%c0_40, %c0_41, %c0_42], %77 {strides = array<i32>} : memref<1x4x3xf32, #tpu.memory_space<vmem>>, vector<1x4x3xf32>,
    } else {
    }
    return
  }
  func.func @transform_0(%arg0: i32, %arg1: i32) -> (i32, i32, i32) {
    %c0_i32 = arith.constant 0 : i32
    %c0_i32_0 = arith.constant 0 : i32
    return %arg0, %c0_i32, %arg1 : i32, i32, i32
  }
  func.func @transform_1(%arg0: i32, %arg1: i32) -> (i32, i32, i32) {
    %c0_i32 = arith.constant 0 : i32
    %c0_i32_0 = arith.constant 0 : i32
    return %arg0, %c0_i32, %arg1 : i32, i32, i32
  }
  func.func @transform_2(%arg0: i32, %arg1: i32) -> (i32, i32, i32) {
    %c0_i32 = arith.constant 0 : i32
    %c0_i32_0 = arith.constant 0 : i32
    return %arg0, %c0_i32, %arg1 : i32, i32, i32
  }
  func.func @transform_3(%arg0: i32, %arg1: i32) -> (i32, i32, i32) {
    %c0_i32 = arith.constant 0 : i32
    %c0_i32_0 = arith.constant 0 : i32
    %c0_i32_1 = arith.constant 0 : i32
    return %arg0, %c0_i32, %c0_i32_0 : i32, i32, i32
  }
}

</mosaic_0001>

<bundles_post_ra>
// kernel: dc_and_topk_loss.1
= control target key start
LH: loop header
LB: loop body
LE: loop exit
PB: predicated region body
PF: predicated region fallthrough
CT: control target
= control target key end

     0   :  { %s678_s12 = smov 0   ;;  %s680_s13 = smov 0   ;;  %s759_s0 = inlined_call_operand.vmem [shape: f32[2,4,256], index: 0, kind: input, shape index: {}]   ;;  %s760_s1 = inlined_call_operand.vmem [shape: s32[2,1,256], index: 1, kind: input, shape index: {}]   ;;  %s761_s2 = inlined_call_operand.vmem [shape: f32[2,1,256], index: 2, kind: output, shape index: {0}]   ;;  %s762_s3 = inlined_call_operand.vmem [shape: f32[2,4,3], index: 3, kind: output, shape index: {1}]  }
   0x1   :  { %s682_s14 = smov 0  }
   0x2 LB: > { %s26_s15 = sadd.s32 1, %s650_s13  ;;  %p581_p0 = scmp.ge.s32.totalorder %s654_s14, 1  ;;  %s654_s14 = sphi %s682_s14, %s14_s14   ;;  %s650_s13 = sphi %s680_s13, %s764_s13   ;;  %s646_s12 = sphi %s678_s12, %s763_s12  }
   0x3   : > { %p28_p1 = scmp.ge.s32.totalorder %s26_s15, 2  ;;  %p177_p2 = scmp.lt.s32.totalorder %s654_s14, 3 }
   0x5   : > { %s766_s15 = smov (%p28_p1, %s26_s15), 0  ;;  %p178_p3 = pnand %p581_p0, %p177_p2 }
   0x6   : > { %p221_p4 = scmp.lt.s32.totalorder (!%p178_p3), %s646_s12, 1 }
   0x7   : > { %181 = sbr.rel (%p178_p3) target bundleno = 234 (0xea), region = 28 }
   0xc   : > { %v281_v0 = vlaneseq  ;;  %s768_s12 = smov (!%p221_p4, %s646_s12), 1  ;;  %vm297_vm0 = vcmask 1043456   ;;  %v656_v11 = vmov 0.0   ;;  %vm444_vm4 = vcmask 7168  }
   0xd   : > { %s584_s16 = sshll.u32 %s768_s12, 1  ;;  %s589_s17 = sshll.u32 %s768_s12, 3  ;;  %vm446_vm5 = vcmask 15360   ;;  %vm448_vm6 = vcmask 19456  }
   0xe   : > { %v699_v1 = vshrl.u32 %v281_v0, 7  ;;  %s237_s20 = scalar_lea.vmem %s760_s1, %s584_s16  ;;  %s228_s23 = scalar_lea.vmem %s759_s0, %s589_s17  ;;  %vm384_vm3 = vcmp.lt.s32.totalorder %v281_v0, 256 }
   0xf   : > { %v280_v4 = vld [vmem:[%s237_s20] sm:$0x3]  ;;  %s246_s26 = scalar_lea.vmem %s761_s2, %s584_s16  ;;  %s586_s27 = sshll.u32 %s768_s12, 2 }
  0x10   : > { %v285_v2 = vsub.s32 0, %v699_v1  ;;  %v289_v3 = vsub.s32 1, %v699_v1  ;;  %v272_v7 = vld [vmem:[%s228_s23] sm:$0xff]  ;;  %s251_s30 = scalar_lea.vmem %s762_s3, %s586_s27 }
  0x11   : > { %v276_v8 = vcombine.high %v272_v7, %v272_v7  ;;  %v298_v9 = vsel %vm297_vm0, %v272_v7, -inf }
  0x12   : > { %v286_v5 = vrot.slane %v280_v4, %v285_v2  ;;  %v290_v6 = vrot.slane %v280_v4, %v289_v3  ;;  %v299_v10 = vrot.slane %v298_v9, 4  ;;  %v657_v2 = vmov 1966171168  }
  0x13   : > { %v305_v14 = vsel %vm297_vm0, %v276_v8, -inf  ;;  %v368_v3 = vunpack.c.l.s4 %v657_v2 }
  0x14   : > { %vm291_vm1 = vcmp.eq.s32.totalorder %v699_v1, %v286_v5  ;;  %vm292_vm2 = vcmp.eq.s32.totalorder %v699_v1, %v290_v6  ;;  %v300_v17 = vmax.f32 %v298_v9, %v299_v10  ;;  %v306_v18 = vrot.slane %v305_v14, 4 }
  0x15   : > { %v716_v12 = vsel %vm291_vm1, 1.0, %v656_v11  ;;  %v718_v13 = vsel %vm292_vm2, 1.0, %v656_v11 }
  0x16   : > { %v408_v15 = vcombine.low %v716_v12, %v718_v13  ;;  %v592_v16 = vcombine.low %v718_v13, %v718_v13  ;;  %v301_v21 = vrot.slane %v300_v17, 2  ;;  %v307_v22 = vmax.f32 %v305_v14, %v306_v18 }
  0x17   : > { %v344_v37 = vmul.f32 %v716_v12, %v272_v7  ;;  %v345_v41 = vmul.f32 %v718_v13, %v276_v8  ;;  %v369_v14 = vunpack.c.0.s8 %v368_v3 }
  0x18   : > { %v437_v19 = vsel %vm297_vm0, %v408_v15, 0.0  ;;  %v438_v20 = vsel %vm297_vm0, %v592_v16, 0.0  ;;  %v302_v24 = vmax.f32 %v300_v17, %v301_v21  ;;  %v308_v25 = vrot.slane %v307_v22, 2 }
  0x19   : > { %v439_v23 = vadd.f32 %v438_v20, %v437_v19  ;;  %v346_v44 = vsel %vm297_vm0, %v344_v37, 0.0  ;;  %v353_v47 = vsel %vm297_vm0, %v345_v41, 0.0 }
  0x1a   : > { %v303_v26 = vrot.slane %v302_v24, 1  ;;  %v309_v27 = vmax.f32 %v307_v22, %v308_v25  ;;  %v347_v50 = vrot.slane %v346_v44, 4  ;;  %v354_v53 = vrot.slane %v353_v47, 4 }
  0x1b   : > { %440 = vadd.xlane.f32.xlu1 %v439_v23  ;;  %v372_v25 = vsub.s32 %v369_v14, %v699_v1 }
  0x1c   : > { %v304_v28 = vmax.f32 %v302_v24, %v303_v26  ;;  %v310_v29 = vrot.slane %v309_v27, 1  ;;  %v348_v56 = vadd.f32 %v347_v50, %v346_v44  ;;  %v355_v58 = vadd.f32 %v354_v53, %v353_v47 }
  0x1e   : > { %v311_v30 = vmax.f32 %v309_v27, %v310_v29  ;;  %v312_v31 = vsub.f32 %v272_v7, %v304_v28  ;;  %v349_v59 = vrot.slane %v348_v56, 2  ;;  %v356_v60 = vrot.slane %v355_v58, 2 }
  0x20   : > { %v313_v32 = vsub.f32 %v276_v8, %v311_v30  ;;  %v314_v33 = vmul.f32 1.442695, %v312_v31  ;;  %v350_v61 = vadd.f32 %v349_v59, %v348_v56  ;;  %v357_v62 = vadd.f32 %v356_v60, %v355_v58 }
  0x22   : > { %620 = vpow2.f32 %v314_v33  ;;  %v316_v34 = vmul.f32 1.442695, %v313_v32  ;;  %v351_v63 = vrot.slane %v350_v61, 1  ;;  %v358_v4 = vrot.slane %v357_v62, 1 }
  0x24   : > { %622 = vpow2.f32 %v316_v34  ;;  %v352_v8 = vadd.f32 %v351_v63, %v350_v61  ;;  %v359_v17 = vadd.f32 %v358_v4, %v357_v62 }
  0x2f   : > { %v621_v35 = vpop.eup %620 }
  0x30   : > { %v318_v36 = vsel %vm297_vm0, %v621_v35, 0.0 }
  0x31   : > { %v623_v38 = vpop.eup %622  ;;  %v319_v39 = vrot.slane %v318_v36, 4 }
  0x32   : > { %v325_v40 = vsel %vm297_vm0, %v623_v38, 0.0 }
  0x33   : > { %v320_v42 = vadd.f32 %v319_v39, %v318_v36  ;;  %v326_v43 = vrot.slane %v325_v40, 4 }
  0x35   : > { %v321_v45 = vrot.slane %v320_v42, 2  ;;  %v327_v46 = vadd.f32 %v326_v43, %v325_v40 }
  0x37   : > { %v322_v48 = vadd.f32 %v321_v45, %v320_v42  ;;  %v328_v49 = vrot.slane %v327_v46, 2 }
  0x39   : > { %v323_v51 = vrot.slane %v322_v48, 1  ;;  %v329_v52 = vadd.f32 %v328_v49, %v327_v46 }
  0x3b   : > { %v324_v54 = vadd.f32 %v323_v51, %v322_v48  ;;  %v330_v55 = vrot.slane %v329_v52, 1 }
  0x3d   : > { %v331_v57 = vadd.f32 %v330_v55, %v329_v52  ;;  %624 = vlog2.f32 %v324_v54 }
  0x3e   : > { %626 = vrcp.f32 %v324_v54 }
  0x3f   : > { %628 = vlog2.f32 %v331_v57 }
  0x40   : > { %630 = vrcp.f32 %v331_v57 }
  0x4a   : > { %v625_v5 = vpop.eup %624 }
  0x4b   : > { %v627_v6 = vpop.eup %626  ;;  %v339_v7 = vmul.f32 0.6931472, %v625_v5 }
  0x4c   : > { %v629_v9 = vpop.eup %628  ;;  %v336_v10 = vmul.f32 %v627_v6, %v621_v35 }
  0x4d   : > { %v631_v11 = vpop.eup %630  ;;  %v341_v15 = vmul.f32 0.6931472, %v629_v9  ;;  %v342_v16 = vadd.f32 %v339_v7, %v304_v28 }
  0x4e   : > { %v337_v18 = vmul.f32 %v631_v11, %v623_v38  ;;  %v388_v19 = vmul.f32 %v336_v10, %v716_v12 }
  0x4f   : > { %v343_v20 = vadd.f32 %v341_v15, %v311_v30  ;;  %v360_v21 = vsub.f32 %v342_v16, %v352_v8 }
  0x50   : > { %v389_v22 = vmul.f32 %v337_v18, %v718_v13  ;;  %v401_v23 = vcombine.low %v336_v10, %v337_v18  ;;  %v591_v24 = vcombine.low %v337_v18, %v337_v18 }
  0x51   : > { %v361_v26 = vsub.f32 %v343_v20, %v359_v17 }
  0x52   : > { %v392_v27 = vcombine.low %v388_v19, %v389_v22  ;;  %v590_v29 = vcombine.low %v389_v22, %v389_v22  ;;  %v428_v12 = vsel %vm297_vm0, %v401_v23, 0.0  ;;  %v429_v30 = vsel %vm297_vm0, %v591_v24, 0.0 }
  0x53   : > { %v366_v31 = vcombine.low %v360_v21, %v361_v26  ;;  %v430_v13 = vadd.f32 %v429_v30, %v428_v12 }
  0x54   : > { %v419_v28 = vsel %vm297_vm0, %v392_v27, 0.0  ;;  %v420_v32 = vsel %vm297_vm0, %v590_v29, 0.0 }
  0x55   : > { %v373_v33 = vrot.slane %v366_v31, %v372_v25  ;;  %v421_v34 = vadd.f32 %v420_v32, %v419_v28 }
  0x57   : > { %v380_v1 = vrot.slane %v373_v33, %v372_v25  ;;  %422 = vadd.xlane.f32.xlu0 %v421_v34 }
  0x59   : > { %386 = vst.msk [vmem:[%s246_s26] sm:$0x3] %vm384_vm3, %v380_v1 }
  0x5b   : > { %431 = vadd.xlane.f32.xlu0 %v430_v13 }
  0xa4   : > { %v441_v36 = vpop.xlane.xlu1 %440 }
  0xe0   : > { %v423_v35 = vpop.xlane.xlu0 %422 }
  0xe1   : > { %v443_v39 = vsub.f32 %v441_v36, %v423_v35 }
  0xe4   : > { %v432_v37 = vpop.xlane.xlu0 %431 }
  0xe5   : > { %v442_v38 = vsub.f32 %v432_v37, %v423_v35 }
  0xe7   : > { %v445_v40 = vsel %vm444_vm4, %v423_v35, %v442_v38 }
  0xe8   : > { %v447_v0 = vsel %vm446_vm5, %v445_v40, %v443_v39 }
  0xe9   : > { %449 = vst.msk [vmem:[%s251_s30] sm:$0xf] %vm448_vm6, %v447_v0 }
  0xea PF: > { %s14_s14 = sadd.s32 1, %s654_s14   ;;  %s763_s12 = smov %s650_s13 }
  0xeb   : > { %p11_p5 = scmp.ge.s32.totalorder %s14_s14, 4   ;;  %s764_s13 = smov %s766_s15 }
  0xed   :  { %13 = sbr.rel (!%p11_p5) target bundleno = 2 (0x2), region = 81 }

</bundles_post_ra>
